<compile_context>
chip_gen: v7x
topology: tpu7x:2x2x1
jax: 0.10.0
libtpu: 0.0.40
codegen_flags: <defaults>
</compile_context>

<pallas_src>
import jax
import jax.numpy as jnp
from jax.experimental import pallas as pl
from jax.experimental.pallas import tpu as pltpu


def _round_up(v, m):
    return (v + m - 1) // m * m


def _vmem_caps():
    """(vmem_limit_bytes, tiling_budget_bytes), generation-aware."""
    try:
        cap = int(pltpu.get_tpu_info().vmem_capacity_bytes)
    except Exception:
        cap = 64 * 1024 * 1024           # conservative: v7x physical VMEM / TC
    limit = int(cap * 0.85)              # headroom for compiler scratch
    budget = int(limit * 0.80)           # our own tiling budget under the limit
    return limit, budget


def _pick_tiles(n, d_pad, budget):
    """Row tile tm and contraction tile tk for the main kernel."""
    n128 = _round_up(max(n, 1), 128)
    # Prefer 512-wide row tiles (~85% of HBM roofline on the streamed A read
    # vs ~29% at 128).  On medium graphs force >=2 row tiles so the "parallel"
    # axis can shard across v7x's two TensorCores.
    if n128 <= 256:
        tm = min(n128, 128)
    elif n128 < 1024:
        tm = _round_up(n128 // 2, 8)
    else:
        tm = 512
    tk = min(512, n128)

    def vmem_use(tm_, tk_):
        # Streamed (double-buffered): A, XW, dinv rows, output.
        streamed = 2 * (tm_ * tk_ * 2 + tk_ * d_pad * 2 + tm_ * 4
                        + tm_ * d_pad * 2)
        # Resident (worst-case double-buffered): W1, W2, 3 biases + f32 acc.
        resident = (2 * (2 * d_pad * d_pad * 2 + 3 * d_pad * 4)
                    + tm_ * d_pad * 4)
        return streamed + resident

    while tk > 128 and vmem_use(tm, tk) > budget:
        tk //= 2
    while tm > 128 and vmem_use(tm, tk) > budget:
        tm = _round_up(tm // 2, 8)
    return tm, tk


# ----------------------------------------------------------------------------
# Kernel 1: XW = dinv * (x @ Wcat)   (row-tiled; scales with N)
# ----------------------------------------------------------------------------
def _xw_kernel(x_ref, dinv_ref, wcat_ref, xw_ref):
    xw = jnp.dot(x_ref[...], wcat_ref[...], preferred_element_type=jnp.float32)
    xw_ref[...] = (dinv_ref[...] * xw).astype(xw_ref.dtype)


def _xw_pallas(x_p, dinv_p, wcat_p, *, tk, vmem_limit):
    n_k, f = x_p.shape
    d_pad = wcat_p.shape[1]
    return pl.pallas_call(
        _xw_kernel,
        out_shape=jax.ShapeDtypeStruct((n_k, d_pad), jnp.bfloat16),
        grid=(n_k // tk,),
        in_specs=[
            pl.BlockSpec((tk, f), lambda i: (i, 0)),        # x rows (streamed)
            pl.BlockSpec((tk, 1), lambda i: (i, 0)),        # dinv rows (f32)
            pl.BlockSpec((f, d_pad), lambda i: (0, 0)),     # Wcat (resident)
        ],
        out_specs=pl.BlockSpec((tk, d_pad), lambda i: (i, 0)),
        compiler_params=pltpu.CompilerParams(
            dimension_semantics=("parallel",),
            vmem_limit_bytes=vmem_limit),
    )(x_p, dinv_p, wcat_p)


# ----------------------------------------------------------------------------
# Kernel 2: K-tiled encoder hot path
#   acc += A_counts[i,k] @ XW[k]                      (f32 scratch accumulator)
#   at last k:  h   = tanh(dinv_rows * acc + bcat)
#               z1  = tanh(h @ W1 + b1)
#               out = tanh(z1 @ W2 + b2)
# ----------------------------------------------------------------------------
def _encoder_kernel(a_ref, xw_ref, dinv_ref, bcat_ref, w1_ref, b1_ref,
                    w2_ref, b2_ref, out_ref, acc_ref):
    k = pl.program_id(1)

    @pl.when(k == 0)
    def _():
        acc_ref[...] = jnp.zeros_like(acc_ref)

    acc_ref[...] += jnp.dot(a_ref[...], xw_ref[...],
                            preferred_element_type=jnp.float32)

    @pl.when(k == pl.num_programs(1) - 1)
    def _():
        h = jnp.tanh(dinv_ref[...] * acc_ref[...] + bcat_ref[...])
        z1 = jnp.tanh(
            jnp.dot(h.astype(jnp.bfloat16), w1_ref[...],
                    preferred_element_type=jnp.float32) + b1_ref[...])
        out_ref[...] = jnp.tanh(
            jnp.dot(z1.astype(jnp.bfloat16), w2_ref[...],
                    preferred_element_type=jnp.float32)
            + b2_ref[...]).astype(out_ref.dtype)


def _encoder_pallas(a_p, xw_p, dinv_p, bcat_p, w1_p, b1_p, w2_p, b2_p,
                    *, tm, tk, vmem_limit):
    n_rows, n_k = a_p.shape
    d_pad = w1_p.shape[1]
    grid = (n_rows // tm, n_k // tk)

    cost = pl.CostEstimate(
        flops=2 * n_rows * n_k * d_pad + 4 * n_rows * d_pad * d_pad,
        transcendentals=3 * n_rows * d_pad,
        bytes_accessed=(n_rows * n_k * 2                     # A counts (bf16)
                        + grid[0] * n_k * d_pad * 2          # XW per row tile
                        + 2 * d_pad * d_pad * 2 + 3 * d_pad * 4
                        + n_rows * 4 + n_rows * d_pad * 2),
    )

    return pl.pallas_call(
        _encoder_kernel,
        out_shape=jax.ShapeDtypeStruct((n_rows, d_pad), jnp.bfloat16),
        grid=grid,
        in_specs=[
            pl.BlockSpec((tm, tk), lambda i, k: (i, k)),        # A counts
            pl.BlockSpec((tk, d_pad), lambda i, k: (k, 0)),     # dinv-scaled XW
            pl.BlockSpec((tm, 1), lambda i, k: (i, 0)),         # dinv rows
            pl.BlockSpec((1, d_pad), lambda i, k: (0, 0)),      # bcat
            pl.BlockSpec((d_pad, d_pad), lambda i, k: (0, 0)),  # W1
            pl.BlockSpec((1, d_pad), lambda i, k: (0, 0)),      # b1
            pl.BlockSpec((d_pad, d_pad), lambda i, k: (0, 0)),  # W2
            pl.BlockSpec((1, d_pad), lambda i, k: (0, 0)),      # b2
        ],
        out_specs=pl.BlockSpec((tm, d_pad), lambda i, k: (i, 0)),
        scratch_shapes=[pltpu.VMEM((tm, d_pad), jnp.float32)],
        compiler_params=pltpu.CompilerParams(
            dimension_semantics=("parallel", "arbitrary"),
            vmem_limit_bytes=vmem_limit),
        cost_estimate=cost,
    )(a_p, xw_p, dinv_p, bcat_p, w1_p, b1_p, w2_p, b2_p)


# ----------------------------------------------------------------------------
# Graph glue (plain JAX, no dense-N^2 re-passes)
# ----------------------------------------------------------------------------
def _edge_norm_terms(edge_index, num_nodes):
    """Per-node D^{-1/2} from the edge list (add self-loop only if missing)."""
    src, dst = edge_index[0], edge_index[1]
    indeg = jnp.zeros((num_nodes,), jnp.float32).at[dst].add(1.0)
    selfc = jnp.zeros((num_nodes,), jnp.float32).at[dst].add(
        (src == dst).astype(jnp.float32))
    deg = indeg + jnp.where(selfc > 0.0, 0.0, 1.0)
    return jax.lax.rsqrt(deg)


def _build_count_matrix(edge_index, num_nodes, n_rows, n_cols):
    """(A + I) integer counts, built directly into the padded bf16 matrix."""
    src, dst = edge_index[0], edge_index[1]
    a = jnp.zeros((n_rows, n_cols), jnp.bfloat16).at[dst, src].add(1.0)
    diag_i = jnp.arange(num_nodes)
    diag = a[diag_i, diag_i]
    a = a.at[diag_i, diag_i].set(jnp.where(diag > 0, diag, 1.0))
    return a


# ----------------------------------------------------------------------------
# Module-equivalent wrapper
# ----------------------------------------------------------------------------
class GraphHistEncoderPallas:
    def __init__(self, input_dim, n_gcns, hist_l, hist_r, n_bins, hidden_dim,
                 key):
        self.input_dim = input_dim
        self.n_gcns = n_gcns
        self.hidden_dim = hidden_dim
        d = n_gcns * hidden_dim
        self.out_dim = d
        self.d_pad = _round_up(d, 128)   # lane-dense last dim

        # Histogram buffers exist in the reference __init__ but are unused in
        # forward — kept for fidelity.
        bin_edges = jnp.linspace(hist_l, hist_r, n_bins + 1)
        self.bin_centers = (bin_edges[:-1] + bin_edges[1:]) / 2.0
        self.bin_sep = self.bin_centers[1] - self.bin_centers[0]

        keys = jax.random.split(key, 2 * n_gcns + 4)
        wcats, bcats = [], []
        for g in range(n_gcns):
            wg = jax.random.normal(keys[2 * g], (hidden_dim, input_dim),
                                   jnp.float32) * 0.1
            bg = jax.random.normal(keys[2 * g + 1], (hidden_dim,),
                                   jnp.float32) * 0.1
            wcats.append(wg.T)
            bcats.append(bg)
        self.wcat = jnp.concatenate(wcats, axis=1)               # [F, D] f32
        self.bcat = jnp.concatenate(bcats)[None, :]              # [1, D] f32

        self.w1t = jax.random.normal(keys[-4], (d, d), jnp.float32) * 0.1
        self.b1 = (jax.random.normal(keys[-3], (d,), jnp.float32) * 0.1)[None, :]
        self.w2t = jax.random.normal(keys[-2], (d, d), jnp.float32) * 0.1
        self.b2 = (jax.random.normal(keys[-1], (d,), jnp.float32) * 0.1)[None, :]

        # Padded MXU copies (weights bf16, biases f32; zero pad keeps math exact).
        dp, f = self.d_pad, input_dim
        self.wcat_p = jnp.zeros((f, dp), jnp.bfloat16).at[:, :d].set(
            self.wcat.astype(jnp.bfloat16))
        self.bcat_p = jnp.zeros((1, dp), jnp.float32).at[:, :d].set(self.bcat)
        self.w1_p = jnp.zeros((dp, dp), jnp.bfloat16).at[:d, :d].set(
            self.w1t.astype(jnp.bfloat16))
        self.b1_p = jnp.zeros((1, dp), jnp.float32).at[:, :d].set(self.b1)
        self.w2_p = jnp.zeros((dp, dp), jnp.bfloat16).at[:d, :d].set(
            self.w2t.astype(jnp.bfloat16))
        self.b2_p = jnp.zeros((1, dp), jnp.float32).at[:, :d].set(self.b2)

    def __call__(self, x, edge_index):
        n = x.shape[0]
        vmem_limit, budget = _vmem_caps()
        tm, tk = _pick_tiles(n, self.d_pad, budget)
        n_rows = _round_up(n, tm)
        n_k = _round_up(n, tk)

        dinv = _edge_norm_terms(edge_index, n)                   # f32 [N]
        a_p = _build_count_matrix(edge_index, n, n_rows, n_k)    # bf16 counts
        dinv_k = jnp.zeros((n_k, 1), jnp.float32).at[:n, 0].set(dinv)
        dinv_r = jnp.zeros((n_rows, 1), jnp.float32).at[:n, 0].set(dinv)
        x_p = jnp.zeros((n_k, self.input_dim), jnp.bfloat16).at[:n, :].set(
            x.astype(jnp.bfloat16))

        xw = _xw_pallas(x_p, dinv_k, self.wcat_p, tk=tk,
                        vmem_limit=vmem_limit)                   # [n_k, D_pad]
        out_p = _encoder_pallas(a_p, xw, dinv_r, self.bcat_p,
                                self.w1_p, self.b1_p, self.w2_p, self.b2_p,
                                tm=tm, tk=tk, vmem_limit=vmem_limit)
        return out_p[:n, :self.out_dim]                          # bf16

    # Pure-JAX reference with identical quantization points (f32 accumulation).
    def reference(self, x, edge_index):
        n = x.shape[0]
        a = _build_count_matrix(edge_index, n, n, n)             # bf16 counts
        dinv = _edge_norm_terms(edge_index, n)                   # f32
        xb = x.astype(jnp.bfloat16)
        xw = dinv[:, None] * jnp.dot(xb, self.wcat.astype(jnp.bfloat16),
                                     preferred_element_type=jnp.float32)
        xw = xw.astype(jnp.bfloat16)
        agg = dinv[:, None] * jnp.dot(a, xw,
                                      preferred_element_type=jnp.float32)
        h = jnp.tanh(agg + self.bcat)
        z1 = jnp.tanh(jnp.dot(h.astype(jnp.bfloat16),
                              self.w1t.astype(jnp.bfloat16),
                              preferred_element_type=jnp.float32) + self.b1)
        c = jnp.tanh(jnp.dot(z1.astype(jnp.bfloat16),
                             self.w2t.astype(jnp.bfloat16),
                             preferred_element_type=jnp.float32) + self.b2)
        return c.astype(jnp.bfloat16)


if __name__ == "__main__":
    # Small, deterministic example.
    N, INPUT_DIM, N_GCNS, HIDDEN_DIM = 32, 16, 2, 32
    HIST_L, HIST_R, N_BINS = -1.0, 1.0, 8
    E = 64

    key = jax.random.PRNGKey(0)
    k_x, k_e, k_p = jax.random.split(key, 3)

    x = jax.random.normal(k_x, (N, INPUT_DIM), jnp.float32)
    edge_index = jax.random.randint(k_e, (2, E), 0, N, jnp.int32)

    enc = GraphHistEncoderPallas(INPUT_DIM, N_GCNS, HIST_L, HIST_R,
                                 N_BINS, HIDDEN_DIM, k_p)

    out = enc(x, edge_index)
    jax.block_until_ready(out)

    ref = enc.reference(x, edge_index)
    assert out.shape == (N, N_GCNS * HIDDEN_DIM)
    assert jnp.allclose(out.astype(jnp.float32), ref.astype(jnp.float32),
                        atol=2e-2, rtol=2e-2), "mismatch vs reference"

    print("KERNEL_OK")
</pallas_src>

<mosaic_0001>
module attributes {stable_mosaic.version = 11 : i64} {
  func.func @_xw_kernel(%arg0: i32, %arg1: memref<128x16xbf16, #tpu.memory_space<vmem>>, %arg2: memref<128x1xf32, #tpu.memory_space<vmem>>, %arg3: memref<16x128xbf16, #tpu.memory_space<vmem>>, %arg4: memref<128x128xbf16, #tpu.memory_space<vmem>>) attributes {dimension_semantics = [#tpu.dimension_semantics<parallel>], iteration_bounds = array<i64: 1>, scalar_prefetch = 0 : i64, scratch_operands = 0 : i64, tpu.core_type = #tpu.core_type<tc>, window_params = [{transform_indices = @transform_0, window_bounds = array<i64: 128, 16>}, {transform_indices = @transform_1, window_bounds = array<i64: 128, 1>}, {pipeline_mode = #tpu.pipeline_mode<synchronous>, transform_indices = @transform_2, window_bounds = array<i64: 16, 128>}, {transform_indices = @transform_3, window_bounds = array<i64: 128, 128>}]} {
    %c0 = arith.constant 0 : index
    %c0_0 = arith.constant 0 : index
    %0 = vector.load %arg1[%c0, %c0_0] : memref<128x16xbf16, #tpu.memory_space<vmem>>, vector<128x16xbf16>
    %c0_1 = arith.constant 0 : index
    %c0_2 = arith.constant 0 : index
    %1 = vector.load %arg3[%c0_1, %c0_2] : memref<16x128xbf16, #tpu.memory_space<vmem>>, vector<16x128xbf16>
    %cst = arith.constant dense<0.000000e+00> : vector<128x128xf32>
    %2 = tpu.matmul %0, %1, %cst {dimension_numbers = #tpu.dot_dimension_numbers<[1], [0], [0], [1], [0, 0, 1, 1], [], []>} : vector<128x16xbf16>, vector<16x128xbf16>, vector<128x128xf32> -> vector<128x128xf32>
    %c0_3 = arith.constant 0 : index
    %c0_4 = arith.constant 0 : index
    %3 = vector.load %arg2[%c0_3, %c0_4] : memref<128x1xf32, #tpu.memory_space<vmem>>, vector<128x1xf32>
    %4 = vector.broadcast %3 : vector<128x1xf32> to vector<128x128xf32>
    %5 = arith.mulf %4, %2 : vector<128x128xf32>
    %6 = arith.truncf %5 : vector<128x128xf32> to vector<128x128xbf16>
    %c0_5 = arith.constant 0 : index
    %c0_6 = arith.constant 0 : index
    %7 = vector.load %arg4[%c0_5, %c0_6] : memref<128x128xbf16, #tpu.memory_space<vmem>>, vector<128x128xbf16>
    tpu.vector_store %arg4[%c0_5, %c0_6], %6 {strides = array<i32>} : memref<128x128xbf16, #tpu.memory_space<vmem>>, vector<128x128xbf16>,
    return
  }
  func.func @transform_0(%arg0: i32) -> (i32, i32) {
    %c0_i32 = arith.constant 0 : i32
    %c0_i32_0 = arith.constant 0 : i32
    return %arg0, %c0_i32 : i32, i32
  }
  func.func @transform_1(%arg0: i32) -> (i32, i32) {
    %c0_i32 = arith.constant 0 : i32
    %c0_i32_0 = arith.constant 0 : i32
    return %arg0, %c0_i32 : i32, i32
  }
  func.func @transform_2(%arg0: i32) -> (i32, i32) {
    %c0_i32 = arith.constant 0 : i32
    %c0_i32_0 = arith.constant 0 : i32
    %c0_i32_1 = arith.constant 0 : i32
    return %c0_i32, %c0_i32_0 : i32, i32
  }
  func.func @transform_3(%arg0: i32) -> (i32, i32) {
    %c0_i32 = arith.constant 0 : i32
    %c0_i32_0 = arith.constant 0 : i32
    return %arg0, %c0_i32 : i32, i32
  }
}

</mosaic_0001>

<bundles_post_ra>
// kernel: tpu_custom_call.1
= control target key start
LH: loop header
LB: loop body
LE: loop exit
PB: predicated region body
PF: predicated region fallthrough
CT: control target
= control target key end

     0   :  { %vm80_vm0 = vcmask 130048   ;;  %v574_v6 = vmov 0   ;;  %s693_s0 = inlined_call_operand.vmem [shape: bf16[128,16], index: 0, kind: input, shape index: {}]   ;;  %s694_s1 = inlined_call_operand.vmem [shape: f32[128,1], index: 1, kind: input, shape index: {}]   ;;  %s695_s2 = inlined_call_operand.vmem [shape: bf16[16,128], index: 2, kind: input, shape index: {}]   ;;  %s696_s3 = inlined_call_operand.hbm [shape: bf16[128,128], index: 3, kind: output, shape index: {}]  }
   0x1   :  { %v541_v0 = vld [vmem:[%s695_s2] sm:$0xff]   ;;  %v544_v3 = vld [vmem:[%s693_s0 + $0x8] sm:$0xff]   ;;  %v546_v5 = vld [vmem:[%s693_s0 + $0x10] sm:$0xff]   ;;  %540 = vset.pattern.permute.xlu1 %v574_v6  ;;  %539 = vset.pattern.permute.xlu0 %v574_v6 }
   0x2   :  { %v542_v1 = vld [vmem:[%s693_s0] sm:$0xff]   ;;  %515 = vmatprep.subr.bf16.mxu0 %v541_v0  ;;  %533 = vmatprep.subr.bf16.mxu1 %v541_v0  ;;  %v545_v4 = vld [vmem:[%s693_s0 + $0x28] sm:$0xff]   ;;  %v547_v7 = vld [vmem:[%s693_s0 + $0x30] sm:$0xff]  }
   0x3   :  { %v543_v2 = vld [vmem:[%s693_s0 + $0x20] sm:$0xff]   ;;  %516 = vmatpush3.bf16.msra.mxu0 %v541_v0  ;;  %534 = vmatpush3.bf16.msra.mxu1 %v541_v0  ;;  %v204_v8 = vld [vmem:[%s694_s1 + $0x10] sm:$0xff]  ;;  %v548_v10 = vld [vmem:[%s693_s0 + $0x18] sm:$0xff]  }
   0x4   :  { %517 = vmatprep.mubr.msk.bf16.mxu0 %vm80_vm0, %v542_v1  ;;  %525 = vmatprep.mubr.msk.bf16.mxu1 %vm80_vm0, %v543_v2  ;;  %v202_v9 = vld [vmem:[%s694_s1] sm:$0xff]  ;;  %v549_v11 = vld [vmem:[%s693_s0 + $0x38] sm:$0xff]   ;;  %v203_v13 = vld [vmem:[%s694_s1 + $0x8] sm:$0xff] }
   0x5   :  { %230 = vperm.xlu1 %540, %v204_v8   ;;  %220 = vperm.xlu0 %539, %v202_v9   ;;  %v205_v12 = vld [vmem:[%s694_s1 + $0x18] sm:$0xff] }
   0x6   :  { %518 = vmatmul.mubr.msk.bf16.vlgmr.msra.gmra.mrb[0].mxu0 %vm80_vm0, %v544_v3  ;;  %526 = vmatmul.mubr.msk.bf16.vlgmr.msra.gmra.mrb[0].mxu1 %vm80_vm0, %v545_v4 }
   0x7   :  { %521 = vmatprep.mubr.msk.bf16.mxu0 %vm80_vm0, %v546_v5  ;;  %529 = vmatprep.mubr.msk.bf16.mxu1 %vm80_vm0, %v547_v7 }
   0xe   :  { %522 = vmatmul.mubr.msk.bf16.gmra.mrb[4].mxu0 %vm80_vm0, %v548_v10  ;;  %530 = vmatmul.mubr.msk.bf16.gmra.mrb[4].mxu1 %vm80_vm0, %v549_v11 }
   0xf   :  { %8 = vsyncpa [#allocation3], 0  ;;  %235 = vperm.xlu1 %540, %v205_v12   ;;  %225 = vperm.xlu0 %539, %v203_v13   ;;  %v207_v14 = vld [vmem:[%s694_s1 + $0x28] sm:$0xff]  ;;  %v206_v15 = vld [vmem:[%s694_s1 + $0x20] sm:$0xff] }
  0x10   :  { %v209_v16 = vld [vmem:[%s694_s1 + $0x38] sm:$0xff]  ;;  %v208_v17 = vld [vmem:[%s694_s1 + $0x30] sm:$0xff]  ;;  %v211_v18 = vld [vmem:[%s694_s1 + $0x48] sm:$0xff] }
  0x11   :  { %v210_v19 = vld [vmem:[%s694_s1 + $0x40] sm:$0xff]  ;;  %v213_v20 = vld [vmem:[%s694_s1 + $0x58] sm:$0xff]  ;;  %v212_v21 = vld [vmem:[%s694_s1 + $0x50] sm:$0xff] }
  0x12   :  { %v215_v22 = vld [vmem:[%s694_s1 + $0x68] sm:$0xff]  ;;  %v214_v23 = vld [vmem:[%s694_s1 + $0x60] sm:$0xff]  ;;  %v217_v24 = vld [vmem:[%s694_s1 + $0x78] sm:$0xff] }
  0x13   :  { %245 = vperm.xlu1 %540, %v207_v14   ;;  %240 = vperm.xlu0 %539, %v206_v15   ;;  %v216_v25 = vld [vmem:[%s694_s1 + $0x70] sm:$0xff]  ;;  %s575_s1 = smov [#allocation2]  }
  0x14   :  { %s399_s5 = sshll.u32 %s575_s1, 4  ;;  %s400_s5 = int_to_ptr.vmem [resolvable:$true] %s399_s5 }
  0x15   :  { %s550_s6 = scalar_lea.vmem %s400_s5, 1024  ;;  %p555_p1 = scmp.lt.s32.totalorder %s400_s5, %s400_s5 }
  0x16   :  { %p551_p0 = scmp.ne.s32.totalorder %s400_s5, %s550_s6  ;;  %p556_p2 = scmp.lt.s32.totalorder %s550_s6, %s550_s6 }
  0x17   :  { %255 = vperm.xlu1 %540, %v209_v16   ;;  %250 = vperm.xlu0 %539, %v208_v17  }
  0x18   :  { %p557_p3 = por %p556_p2, %p555_p1 }
  0x1a   :  { %p558_p4 = pnand %p557_p3, %p551_p0 }
  0x1b   :  { %265 = vperm.xlu1 %540, %v211_v18   ;;  %260 = vperm.xlu0 %539, %v210_v19  }
  0x1f   :  { %275 = vperm.xlu1 %540, %v213_v20   ;;  %270 = vperm.xlu0 %539, %v212_v21  }
  0x23   :  { %285 = vperm.xlu1 %540, %v215_v22   ;;  %280 = vperm.xlu0 %539, %v214_v23  }
  0x27   :  { %295 = vperm.xlu1 %540, %v217_v24   ;;  %290 = vperm.xlu0 %539, %v216_v25  }
  0x84   :  { %v231_v26 = vpop.permute.xlu1 %230  ;;  %v221_v27 = vpop.permute.xlu0 %220 }
  0x8e   :  { %v236_v28 = vpop.permute.xlu1 %235  ;;  %v226_v29 = vpop.permute.xlu0 %225 }
  0x92   :  { %v246_v30 = vpop.permute.xlu1 %245  ;;  %v241_v31 = vpop.permute.xlu0 %240 }
  0x96   :  { %v256_v32 = vpop.permute.xlu1 %255  ;;  %v251_v33 = vpop.permute.xlu0 %250 }
  0x9a   :  { %v266_v34 = vpop.permute.xlu1 %265  ;;  %v261_v35 = vpop.permute.xlu0 %260 }
  0x9e   :  { %v276_v36 = vpop.permute.xlu1 %275  ;;  %v271_v37 = vpop.permute.xlu0 %270 }
  0xa2   :  { %v286_v38 = vpop.permute.xlu1 %285  ;;  %v281_v39 = vpop.permute.xlu0 %280 }
  0xa6   :  { %v296_v60 = vpop.permute.xlu1 %295  ;;  %v291_v61 = vpop.permute.xlu0 %290 }
  0xd9   :  { %v519_v40 = vpop.f32.mrb[0].mxu0  ;;  %v527_v41 = vpop.f32.mrb[0].mxu1 }
  0xda   :  { %v139_v42 = vpop.f32.mrb[1].mxu0  ;;  %v171_v43 = vpop.f32.mrb[1].mxu1  ;;  %v300_v46 = vmul.f32 %v519_v40, %v231_v26  ;;  %v308_v47 = vmul.f32 %v527_v41, %v271_v37 }
  0xdb   :  { %v520_v44 = vpop.f32.mrb[2].mxu0  ;;  %v528_v45 = vpop.f32.mrb[2].mxu1  ;;  %v298_v52 = vmul.f32 %v221_v27, %v139_v42  ;;  %v306_v53 = vmul.f32 %v261_v35, %v171_v43 }
  0xdc   :  { %v301_v48 = vmul.f32 %v520_v44, %v236_v28  ;;  %v309_v49 = vmul.f32 %v528_v45, %v276_v36  ;;  %v142_v50 = vpop.f32.mrb[3].mxu0  ;;  %v174_v51 = vpop.f32.mrb[3].mxu1 }
  0xdd   :  { %v299_v54 = vmul.f32 %v226_v29, %v142_v50  ;;  %v307_v55 = vmul.f32 %v266_v34, %v174_v51 }
  0xde   :  { %v467_v56 = vpack.c.bf16 %v301_v48, %v300_v46  ;;  %v487_v57 = vpack.c.bf16 %v309_v49, %v308_v47 }
  0xdf   :  { %v462_v58 = vpack.c.bf16 %v299_v54, %v298_v52  ;;  %v482_v59 = vpack.c.bf16 %v307_v55, %v306_v53 }
  0xe0   :  { %499 = vst [vmem:[#allocation2 + $0x8] sm:$0xff] %v467_v56   ;;  %503 = vst [vmem:[#allocation2 + $0x28] sm:$0xff] %v487_v57  }
  0xe1   :  { %463 = vst [vmem:[#allocation2] sm:$0xff] %v462_v58   ;;  %502 = vst [vmem:[#allocation2 + $0x20] sm:$0xff] %v482_v59   ;;  %v523_v62 = vpop.f32.mrb[4].mxu0  ;;  %v531_v63 = vpop.f32.mrb[4].mxu1 }
  0xe2   :  { %v155_v0 = vpop.f32.mrb[5].mxu0  ;;  %v187_v1 = vpop.f32.mrb[5].mxu1  ;;  %v304_v4 = vmul.f32 %v523_v62, %v251_v33  ;;  %v312_v5 = vmul.f32 %v531_v63, %v291_v61 }
  0xe3   :  { %v524_v2 = vpop.f32.mrb[6].mxu0  ;;  %v532_v3 = vpop.f32.mrb[6].mxu1  ;;  %v302_v10 = vmul.f32 %v241_v31, %v155_v0  ;;  %v310_v11 = vmul.f32 %v281_v39, %v187_v1 }
  0xe4   :  { %v305_v6 = vmul.f32 %v524_v2, %v256_v32  ;;  %v313_v7 = vmul.f32 %v532_v3, %v296_v60  ;;  %v158_v8 = vpop.f32.mrb[7].mxu0  ;;  %v190_v9 = vpop.f32.mrb[7].mxu1 }
  0xe5   :  { %v303_v12 = vmul.f32 %v246_v30, %v158_v8  ;;  %v311_v13 = vmul.f32 %v286_v38, %v190_v9 }
  0xe6   :  { %v477_v14 = vpack.c.bf16 %v305_v6, %v304_v4  ;;  %v497_v15 = vpack.c.bf16 %v313_v7, %v312_v5 }
  0xe7   :  { %v472_v16 = vpack.c.bf16 %v303_v12, %v302_v10  ;;  %v492_v17 = vpack.c.bf16 %v311_v13, %v310_v11 }
  0xe8   :  { %501 = vst [vmem:[#allocation2 + $0x18] sm:$0xff] %v477_v14   ;;  %505 = vst [vmem:[#allocation2 + $0x38] sm:$0xff] %v497_v15  }
  0xe9   :  { %500 = vst [vmem:[#allocation2 + $0x10] sm:$0xff] %v472_v16   ;;  %504 = vst [vmem:[#allocation2 + $0x30] sm:$0xff] %v492_v17  }
  0xea   :  { %561 = shalt.err (!%p558_p4)
}
  0xeb   :  { %s562_s9 = scalar_lea.hbm %s696_s3, 1024 }
  0xec   :  { %p563_p5 = scmp.ne.s32.totalorder %s696_s3, %s562_s9  ;;  %p566_p6 = scmp.lt.u32.totalorder %s562_s9, %s696_s3 }
  0xee   :  { %p568_p7 = pnand %p566_p6, %p563_p5 }
  0xf0   :  { %571 = shalt.err (!%p568_p7)
}
  0xf1   :  { %s576_s13 = smov 64   ;;  %s577_s14 = smov 4  }
  0xf2   :  { %405 = dma.vmem_to_hbm [thread:$0]  %s400_s5, 1024, %s696_s3, [#allocation3], %s576_s13, %s576_s13, %s577_s14  }
  0xf3   :  { %572 = dma.done.wait [#allocation3], 1024  }
  0xf4   :  { %573 = vsyncadd [#allocation3], 4294966272 }
  0xf5   :  { %409 = vsyncpa [#allocation3], 1 }

</bundles_post_ra>
